<compile_context>
chip_gen: v5e
topology: v5e:2x2
jax: 0.10.0
libtpu: 0.0.40
codegen_flags: <defaults>
</compile_context>

<pallas_src>
import jax
import jax.numpy as jnp
from jax.experimental import pallas as pl
from jax.experimental.pallas import tpu as pltpu


def _distance_head_kernel(x_ref, wd_ref, bd_ref, g_ref, beta_ref, wo_ref, bo_ref, o_ref):
    # x_ref   : (1, TR, H)   bf16 (or f32) tile of TR = TS*S flattened pair rows
    # wd_ref  : (H, H)       dense weight (in, out) in the matmul dtype
    # bd_ref  : (1, H)  f32  dense bias
    # g_ref   : (1, H)  f32  layer_norm weight
    # beta_ref: (1, H)  f32  layer_norm bias
    # wo_ref  : (1, H)  f32  out_proj weight
    # bo_ref  : (1, 1)  f32  out_proj bias (SMEM scalar)
    # o_ref   : (1, S, S) f32 resident output block for the current batch element
    t = pl.program_id(1)
    TR = x_ref.shape[1]
    S = o_ref.shape[1]
    TS = TR // S

    x = x_ref[0]                                            # (TR, H), already 2-D rows
    # x[x == -inf] = 0  (mask on the loaded dtype; bf16 preserves -inf)
    x = jnp.where(x == -jnp.inf, jnp.zeros_like(x), x)
    x = x.astype(wd_ref.dtype)

    # dense: x @ Wd + bd   (MXU matmul, f32 accumulation)
    h = jnp.dot(x, wd_ref[...], preferred_element_type=jnp.float32) + bd_ref[...]

    # activation_fn = gelu (tanh approximation; EUP tanh)
    h = jax.nn.gelu(h, approximate=True)

    # layer norm over heads (eps = 1e-5, matching nn.LayerNorm default), all in f32
    mean = jnp.mean(h, axis=-1, keepdims=True)
    cent = h - mean
    var = jnp.mean(cent * cent, axis=-1, keepdims=True)
    h = cent * jax.lax.rsqrt(var + 1e-5)
    h = h * g_ref[...] + beta_ref[...]

    # out_proj: Linear(H, 1) as a weighted reduction over heads + SMEM scalar bias
    y = jnp.sum(h * wo_ref[...], axis=-1, keepdims=True) + bo_ref[0, 0]   # (TR, 1)
    y = y.reshape(TS, S)                                    # tiny f32 relayout only

    # write this tile's rows into the resident (S, S) output block
    row0 = pl.multiple_of(t * TS, TS)
    o_ref[0, pl.ds(row0, TS), :] = y

    # epilogue on the last row-tile of this batch element: symmetrize in place
    @pl.when(t == pl.num_programs(1) - 1)
    def _():
        full = o_ref[0]                                     # (S, S) f32
        o_ref[0] = 0.5 * (full + full.T)


def _pick_row_tile(S, H, itemsize, budget_bytes=2 << 20):
    """Largest TS dividing S whose (TS, S, H) input tile fits the byte budget and
    keeps the flattened row count a multiple of 8 (sublane constraint)."""
    candidates = [ts for ts in range(1, S + 1)
                  if S % ts == 0 and ((ts * S) % 8 == 0 or ts == S)]
    fitting = [ts for ts in candidates if ts * S * H * itemsize <= budget_bytes]
    return max(fitting) if fitting else min(candidates)


def distance_head(x, wd, bd, gamma, beta, wo, bo, *, row_tile=None,
                  matmul_dtype=jnp.bfloat16):
    """x: (B, S, S, H) float32 or bfloat16.  Returns (B, S, S) float32, symmetrized."""
    B, S, S2, H = x.shape
    assert S == S2

    # Flatten the pair axes once in HBM (metadata-only reshape) so the kernel
    # never has to merge axes in VMEM.
    x2 = x.reshape(B, S * S, H)
    wd_c = wd.astype(matmul_dtype)

    if row_tile is None:
        row_tile = _pick_row_tile(S, H, jnp.dtype(x2.dtype).itemsize)
    TS = int(row_tile)
    assert S % TS == 0 and ((TS * S) % 8 == 0 or TS == S), "bad row_tile"
    TR = TS * S
    n_tiles = S // TS

    const2d = lambda b, t: (0, 0)
    itemsize = jnp.dtype(x2.dtype).itemsize
    cost = pl.CostEstimate(
        flops=2 * B * S * S * H * H + 12 * B * S * S * H,
        transcendentals=B * S * S * H,
        bytes_accessed=B * S * S * H * itemsize + B * S * S * 4
                       + (H * H + 4 * H + 1) * 4,
    )

    return pl.pallas_call(
        _distance_head_kernel,
        out_shape=jax.ShapeDtypeStruct((B, S, S), jnp.float32),
        grid=(B, n_tiles),
        in_specs=[
            pl.BlockSpec((1, TR, H), lambda b, t: (b, t, 0)),     # row tile of pair map
            pl.BlockSpec((H, H), const2d),                        # dense weight
            pl.BlockSpec((1, H), const2d),                        # dense bias
            pl.BlockSpec((1, H), const2d),                        # ln gamma
            pl.BlockSpec((1, H), const2d),                        # ln beta
            pl.BlockSpec((1, H), const2d),                        # out_proj weight
            pl.BlockSpec(memory_space=pltpu.MemorySpace.SMEM),    # out_proj bias scalar
        ],
        # same block index across the row-tile axis -> resident accumulator block
        out_specs=pl.BlockSpec((1, S, S), lambda b, t: (b, 0, 0)),
        compiler_params=pltpu.CompilerParams(
            dimension_semantics=("parallel", "arbitrary"),
            vmem_limit_bytes=32 * 1024 * 1024,
        ),
        cost_estimate=cost,
    )(x2, wd_c, bd, gamma, beta, wo, bo)


def _reference(x, wd, bd, gamma, beta, wo, bo):
    x = x.astype(jnp.float32)
    x = jnp.where(x == -jnp.inf, 0.0, x)
    h = x @ wd + bd[0]
    h = jax.nn.gelu(h, approximate=True)
    mean = jnp.mean(h, axis=-1, keepdims=True)
    var = jnp.mean((h - mean) ** 2, axis=-1, keepdims=True)
    h = (h - mean) * jax.lax.rsqrt(var + 1e-5)
    h = h * gamma[0] + beta[0]
    y = jnp.sum(h * wo[0], axis=-1) + bo[0, 0]
    return 0.5 * (y + jnp.swapaxes(y, -1, -2))


if __name__ == "__main__":
    B, S, H = 2, 8, 32  # batch, seq_len, heads

    key = jax.random.PRNGKey(0)
    kx, kwd, kbd, kwo, kbo = jax.random.split(key, 5)

    x = jax.random.normal(kx, (B, S, S, H), dtype=jnp.float32)
    # sprinkle some -inf entries like the module expects to handle
    x = x.at[0, 0, 1, :].set(-jnp.inf)
    x = x.at[1, 3, 2, 5].set(-jnp.inf)
    # pair map arrives in bf16 (halves HBM read traffic; bf16 preserves -inf)
    x = x.astype(jnp.bfloat16)

    # deterministic parameter init (nn.Linear / nn.LayerNorm shapes)
    wd = jax.random.normal(kwd, (H, H), dtype=jnp.float32) * 0.05   # dense weight (in, out)
    bd = jax.random.normal(kbd, (1, H), dtype=jnp.float32) * 0.05   # dense bias
    gamma = jnp.ones((1, H), dtype=jnp.float32)                     # layer_norm weight
    beta = jnp.zeros((1, H), dtype=jnp.float32)                     # layer_norm bias
    wo = jax.random.normal(kwo, (1, H), dtype=jnp.float32) * 0.05   # out_proj weight (1, H)
    bo = jax.random.normal(kbo, (1, 1), dtype=jnp.float32) * 0.05   # out_proj bias

    # row_tile=2 -> grid=(2, 4): exercises the multi-tile accumulate + epilogue path
    out = distance_head(x, wd, bd, gamma, beta, wo, bo, row_tile=2)
    out = jax.block_until_ready(out)

    ref = _reference(x, wd, bd, gamma, beta, wo, bo)
    assert out.shape == (B, S, S)
    assert out.dtype == jnp.float32
    assert jnp.allclose(out, ref, atol=2e-2, rtol=2e-2), "mismatch vs reference"
    assert jnp.allclose(out, jnp.swapaxes(out, -1, -2)), "output not symmetric"

    print("KERNEL_OK")
</pallas_src>

<mosaic_0001>
module attributes {stable_mosaic.version = 11 : i64} {
  func.func @_distance_head_kernel(%arg0: i32, %arg1: i32, %arg2: memref<1x16x32xbf16, #tpu.memory_space<vmem>>, %arg3: memref<32x32xbf16, #tpu.memory_space<vmem>>, %arg4: memref<1x32xf32, #tpu.memory_space<vmem>>, %arg5: memref<1x32xf32, #tpu.memory_space<vmem>>, %arg6: memref<1x32xf32, #tpu.memory_space<vmem>>, %arg7: memref<1x32xf32, #tpu.memory_space<vmem>>, %arg8: memref<1x1xf32, #tpu.memory_space<smem>>, %arg9: memref<1x8x8xf32, #tpu.memory_space<vmem>>) attributes {dimension_semantics = [#tpu.dimension_semantics<parallel>, #tpu.dimension_semantics<arbitrary>], iteration_bounds = array<i64: 2, 4>, scalar_prefetch = 0 : i64, scratch_operands = 0 : i64, tpu.core_type = #tpu.core_type<tc>, window_params = [{transform_indices = @transform_0, window_bounds = array<i64: 1, 16, 32>}, {pipeline_mode = #tpu.pipeline_mode<synchronous>, transform_indices = @transform_1, window_bounds = array<i64: 32, 32>}, {pipeline_mode = #tpu.pipeline_mode<synchronous>, transform_indices = @transform_2, window_bounds = array<i64: 1, 32>}, {pipeline_mode = #tpu.pipeline_mode<synchronous>, transform_indices = @transform_3, window_bounds = array<i64: 1, 32>}, {pipeline_mode = #tpu.pipeline_mode<synchronous>, transform_indices = @transform_4, window_bounds = array<i64: 1, 32>}, {pipeline_mode = #tpu.pipeline_mode<synchronous>, transform_indices = @transform_5, window_bounds = array<i64: 1, 32>}, {transform_indices = @transform_6, window_bounds = array<i64: 1, 1>}, {transform_indices = @transform_7, window_bounds = array<i64: 1, 8, 8>}]} {
    %c0 = arith.constant 0 : index
    %c0_0 = arith.constant 0 : index
    %c0_1 = arith.constant 0 : index
    %0 = vector.load %arg2[%c0, %c0_0, %c0_1] : memref<1x16x32xbf16, #tpu.memory_space<vmem>>, vector<1x16x32xbf16>
    %1 = vector.shape_cast %0 : vector<1x16x32xbf16> to vector<16x32xbf16>
    %cst = arith.constant 0xFF80 : bf16
    %2 = vector.broadcast %cst : bf16 to vector<16x32xbf16>
    %3 = arith.cmpf oeq, %1, %2 : vector<16x32xbf16>
    %cst_2 = arith.constant 0.000000e+00 : bf16
    %4 = vector.broadcast %cst_2 : bf16 to vector<16x32xbf16>
    %5 = arith.select %3, %4, %1 : vector<16x32xi1>, vector<16x32xbf16>
    %c0_3 = arith.constant 0 : index
    %c0_4 = arith.constant 0 : index
    %6 = vector.load %arg3[%c0_3, %c0_4] : memref<32x32xbf16, #tpu.memory_space<vmem>>, vector<32x32xbf16>
    %cst_5 = arith.constant dense<0.000000e+00> : vector<16x32xf32>
    %7 = tpu.matmul %5, %6, %cst_5 {dimension_numbers = #tpu.dot_dimension_numbers<[1], [0], [0], [1], [0, 0, 1, 1], [], []>} : vector<16x32xbf16>, vector<32x32xbf16>, vector<16x32xf32> -> vector<16x32xf32>
    %c0_6 = arith.constant 0 : index
    %c0_7 = arith.constant 0 : index
    %8 = vector.load %arg4[%c0_6, %c0_7] : memref<1x32xf32, #tpu.memory_space<vmem>>, vector<1x32xf32>
    %9 = vector.broadcast %8 : vector<1x32xf32> to vector<16x32xf32>
    %10 = arith.addf %7, %9 : vector<16x32xf32>
    %11 = arith.mulf %10, %10 : vector<16x32xf32>
    %12 = arith.mulf %10, %11 : vector<16x32xf32>
    %cst_8 = arith.constant 4.471500e-02 : f32
    %13 = vector.broadcast %cst_8 : f32 to vector<16x32xf32>
    %14 = arith.mulf %13, %12 : vector<16x32xf32>
    %15 = arith.addf %10, %14 : vector<16x32xf32>
    %cst_9 = arith.constant 0.797884583 : f32
    %16 = vector.broadcast %cst_9 : f32 to vector<16x32xf32>
    %17 = arith.mulf %16, %15 : vector<16x32xf32>
    %18 = math.tanh %17 : vector<16x32xf32>
    %cst_10 = arith.constant 1.000000e+00 : f32
    %19 = vector.broadcast %cst_10 : f32 to vector<16x32xf32>
    %20 = arith.addf %19, %18 : vector<16x32xf32>
    %cst_11 = arith.constant 5.000000e-01 : f32
    %21 = vector.broadcast %cst_11 : f32 to vector<16x32xf32>
    %22 = arith.mulf %21, %20 : vector<16x32xf32>
    %23 = arith.mulf %10, %22 : vector<16x32xf32>
    %cst_12 = arith.constant dense<0.000000e+00> : vector<16xf32>
    %24 = vector.multi_reduction <add>, %23, %cst_12 [1] : vector<16x32xf32> to vector<16xf32>
    %25 = vector.shape_cast %24 : vector<16xf32> to vector<16x1xf32>
    %cst_13 = arith.constant 3.200000e+01 : f32
    %26 = vector.broadcast %cst_13 : f32 to vector<16x1xf32>
    %27 = arith.divf %25, %26 : vector<16x1xf32>
    %28 = vector.broadcast %27 : vector<16x1xf32> to vector<16x32xf32>
    %29 = arith.subf %23, %28 : vector<16x32xf32>
    %30 = arith.mulf %29, %29 : vector<16x32xf32>
    %cst_14 = arith.constant dense<0.000000e+00> : vector<16xf32>
    %31 = vector.multi_reduction <add>, %30, %cst_14 [1] : vector<16x32xf32> to vector<16xf32>
    %32 = vector.shape_cast %31 : vector<16xf32> to vector<16x1xf32>
    %cst_15 = arith.constant 3.200000e+01 : f32
    %33 = vector.broadcast %cst_15 : f32 to vector<16x1xf32>
    %34 = arith.divf %32, %33 : vector<16x1xf32>
    %cst_16 = arith.constant 9.99999974E-6 : f32
    %35 = vector.broadcast %cst_16 : f32 to vector<16x1xf32>
    %36 = arith.addf %34, %35 : vector<16x1xf32>
    %37 = math.rsqrt %36 : vector<16x1xf32>
    %38 = vector.broadcast %37 : vector<16x1xf32> to vector<16x32xf32>
    %39 = arith.mulf %29, %38 : vector<16x32xf32>
    %c0_17 = arith.constant 0 : index
    %c0_18 = arith.constant 0 : index
    %40 = vector.load %arg5[%c0_17, %c0_18] : memref<1x32xf32, #tpu.memory_space<vmem>>, vector<1x32xf32>
    %41 = vector.broadcast %40 : vector<1x32xf32> to vector<16x32xf32>
    %42 = arith.mulf %39, %41 : vector<16x32xf32>
    %c0_19 = arith.constant 0 : index
    %c0_20 = arith.constant 0 : index
    %43 = vector.load %arg6[%c0_19, %c0_20] : memref<1x32xf32, #tpu.memory_space<vmem>>, vector<1x32xf32>
    %44 = vector.broadcast %43 : vector<1x32xf32> to vector<16x32xf32>
    %45 = arith.addf %42, %44 : vector<16x32xf32>
    %c0_21 = arith.constant 0 : index
    %c0_22 = arith.constant 0 : index
    %46 = vector.load %arg7[%c0_21, %c0_22] : memref<1x32xf32, #tpu.memory_space<vmem>>, vector<1x32xf32>
    %47 = vector.broadcast %46 : vector<1x32xf32> to vector<16x32xf32>
    %48 = arith.mulf %45, %47 : vector<16x32xf32>
    %cst_23 = arith.constant dense<0.000000e+00> : vector<16xf32>
    %49 = vector.multi_reduction <add>, %48, %cst_23 [1] : vector<16x32xf32> to vector<16xf32>
    %50 = vector.shape_cast %49 : vector<16xf32> to vector<16x1xf32>
    %c0_24 = arith.constant 0 : index
    %c0_25 = arith.constant 0 : index
    %51 = memref.load %arg8[%c0_24, %c0_25] : memref<1x1xf32, #tpu.memory_space<smem>>
    %52 = vector.broadcast %51 : f32 to vector<16x1xf32>
    %53 = arith.addf %50, %52 : vector<16x1xf32>
    %54 = vector.shape_cast %53 : vector<16x1xf32> to vector<2x8xf32>
    %c2_i32 = arith.constant 2 : i32
    %55 = arith.muli %arg1, %c2_i32 : i32
    %56 = tpu.assume_multiple %55, 2 : i32
    %c0_26 = arith.constant 0 : index
    %57 = arith.index_cast %56 : i32 to index
    %c0_27 = arith.constant 0 : index
    %58 = vector.load %arg9[%c0_26, %57, %c0_27] : memref<1x8x8xf32, #tpu.memory_space<vmem>>, vector<1x2x8xf32>
    %59 = vector.shape_cast %58 : vector<1x2x8xf32> to vector<2x8xf32>
    %60 = vector.shape_cast %54 : vector<2x8xf32> to vector<1x2x8xf32>
    tpu.vector_store %arg9[%c0_26, %57, %c0_27], %60 {strides = array<i32>} : memref<1x8x8xf32, #tpu.memory_space<vmem>>, vector<1x2x8xf32>,
    %c3_i32 = arith.constant 3 : i32
    %61 = arith.cmpi eq, %arg1, %c3_i32 : i32
    %62 = arith.extui %61 : i1 to i32
    %c0_i32 = arith.constant 0 : i32
    %63 = arith.cmpi ne, %62, %c0_i32 : i32
    scf.if %63 {
      %c0_28 = arith.constant 0 : index
      %c0_29 = arith.constant 0 : index
      %c0_30 = arith.constant 0 : index
      %64 = vector.load %arg9[%c0_28, %c0_29, %c0_30] : memref<1x8x8xf32, #tpu.memory_space<vmem>>, vector<1x8x8xf32>
      %65 = vector.shape_cast %64 : vector<1x8x8xf32> to vector<8x8xf32>
      %66 = tpu.transpose %65, [1, 0] : vector<8x8xf32> -> vector<8x8xf32>
      %67 = arith.addf %65, %66 : vector<8x8xf32>
      %cst_31 = arith.constant 5.000000e-01 : f32
      %68 = vector.broadcast %cst_31 : f32 to vector<8x8xf32>
      %69 = arith.mulf %68, %67 : vector<8x8xf32>
      %c0_32 = arith.constant 0 : index
      %c0_33 = arith.constant 0 : index
      %c0_34 = arith.constant 0 : index
      %70 = vector.load %arg9[%c0_32, %c0_33, %c0_34] : memref<1x8x8xf32, #tpu.memory_space<vmem>>, vector<1x8x8xf32>
      %71 = vector.shape_cast %70 : vector<1x8x8xf32> to vector<8x8xf32>
      %72 = vector.shape_cast %69 : vector<8x8xf32> to vector<1x8x8xf32>
      tpu.vector_store %arg9[%c0_32, %c0_33, %c0_34], %72 {strides = array<i32>} : memref<1x8x8xf32, #tpu.memory_space<vmem>>, vector<1x8x8xf32>,
    } else {
    }
    return
  }
  func.func @transform_0(%arg0: i32, %arg1: i32) -> (i32, i32, i32) {
    %c0_i32 = arith.constant 0 : i32
    %c0_i32_0 = arith.constant 0 : i32
    return %arg0, %arg1, %c0_i32 : i32, i32, i32
  }
  func.func @transform_1(%arg0: i32, %arg1: i32) -> (i32, i32) {
    %c0_i32 = arith.constant 0 : i32
    %c0_i32_0 = arith.constant 0 : i32
    %c0_i32_1 = arith.constant 0 : i32
    return %c0_i32, %c0_i32_0 : i32, i32
  }
  func.func @transform_2(%arg0: i32, %arg1: i32) -> (i32, i32) {
    %c0_i32 = arith.constant 0 : i32
    %c0_i32_0 = arith.constant 0 : i32
    %c0_i32_1 = arith.constant 0 : i32
    return %c0_i32, %c0_i32_0 : i32, i32
  }
  func.func @transform_3(%arg0: i32, %arg1: i32) -> (i32, i32) {
    %c0_i32 = arith.constant 0 : i32
    %c0_i32_0 = arith.constant 0 : i32
    %c0_i32_1 = arith.constant 0 : i32
    return %c0_i32, %c0_i32_0 : i32, i32
  }
  func.func @transform_4(%arg0: i32, %arg1: i32) -> (i32, i32) {
    %c0_i32 = arith.constant 0 : i32
    %c0_i32_0 = arith.constant 0 : i32
    %c0_i32_1 = arith.constant 0 : i32
    return %c0_i32, %c0_i32_0 : i32, i32
  }
  func.func @transform_5(%arg0: i32, %arg1: i32) -> (i32, i32) {
    %c0_i32 = arith.constant 0 : i32
    %c0_i32_0 = arith.constant 0 : i32
    %c0_i32_1 = arith.constant 0 : i32
    return %c0_i32, %c0_i32_0 : i32, i32
  }
  func.func @transform_6(%arg0: i32, %arg1: i32) -> (i32, i32) {
    %c0_i32 = arith.constant 0 : i32
    %c0_i32_0 = arith.constant 0 : i32
    %c0_i32_1 = arith.constant 0 : i32
    return %c0_i32, %c0_i32_0 : i32, i32
  }
  func.func @transform_7(%arg0: i32, %arg1: i32) -> (i32, i32, i32) {
    %c0_i32 = arith.constant 0 : i32
    %c0_i32_0 = arith.constant 0 : i32
    %c0_i32_1 = arith.constant 0 : i32
    return %arg0, %c0_i32, %c0_i32_0 : i32, i32, i32
  }
}

</mosaic_0001>

<bundles_post_ra>
// kernel: tpu_custom_call.1
= control target key start
LH: loop header
LB: loop body
LE: loop exit
PB: predicated region body
PF: predicated region fallthrough
CT: control target
= control target key end

     0   :  { %s1011_s0 = inlined_call_operand.vmem [shape: bf16[2,64,32], index: 0, kind: input, shape index: {}]   ;;  %s1012_s1 = inlined_call_operand.vmem [shape: bf16[32,32], index: 1, kind: input, shape index: {}]   ;;  %s1013_s2 = inlined_call_operand.vmem [shape: f32[1,32], index: 2, kind: input, shape index: {}]   ;;  %s1014_s3 = inlined_call_operand.vmem [shape: f32[1,32], index: 3, kind: input, shape index: {}]   ;;  %s1015_s4 = inlined_call_operand.vmem [shape: f32[1,32], index: 4, kind: input, shape index: {}]   ;;  %s1016_s5 = inlined_call_operand.vmem [shape: f32[1,32], index: 5, kind: input, shape index: {}]   ;;  %s1017_s6 = inlined_call_operand.<no memory space> [shape: f32[1,1], index: 6, kind: input, shape index: {}]   ;;  %s1018_s7 = inlined_call_operand.hbm [shape: f32[2,8,8], index: 7, kind: output, shape index: {}]  }
   0x1   :  { %1019 = sst [smem:[#allocation6_spill]] %s1011_s0 }
   0x2   :  { %1020 = sst [smem:[#allocation7_spill]] %s1012_s1 }
   0x3   :  { %12 = sst [smem:[#allocation2]] %s1017_s6 }
   0x4   :  { %13 = vsyncpa [#allocation4], 0 }
   0x5   :  { %15 = vsyncpa [#allocation4 + $0x1], 0  ;;  %s858_s26 = smov 0   ;;  %s860_s27 = smov 0  }
   0x6   :  { %s862_s28 = smov 0   ;;  %s864_s29 = smov 0  }
   0x7   :  { %s866_s30 = smov 0   ;;  %s868_s8 = smov 0  }
   0x8   :  { %s870_s9 = smov 0   ;;  %s872_s10 = smov 0  }
   0x9 LB: > { %s605_s6 = sadd.s32 4294967295, %s812_s10   ;;  %s606_s11 = sadd.s32 4294967294, %s812_s10   ;;  %s812_s10 = sphi %s872_s10, %s21_s10   ;;  %s808_s9 = sphi %s870_s9, %s1031_s9   ;;  %s804_s8 = sphi %s868_s8, %s1030_s8   ;;  %s800_s30 = sphi %s866_s30, %s1029_s30   ;;  %s796_s29 = sphi %s864_s29, %s1028_s29   ;;  %s792_s28 = sphi %s862_s28, %s1027_s28   ;;  %s788_s27 = sphi %s860_s27, %s1026_s27   ;;  %s784_s26 = sphi %s858_s26, %s1025_s26  }
   0xa   : > { %s30_s12 = sadd.s32 1, %s804_s8  ;;  %s33_s13 = sadd.s32 1, %s808_s9 }
   0xb   : > { %p31_p0 = scmp.ge.s32.totalorder %s30_s12, 4  ;;  %p204_p1 = scmp.ne.s32.totalorder %s792_s28, %s788_s27 }
   0xc   : > { %p205_p2 = scmp.eq.s32.totalorder %s605_s6, 7  ;;  %p210_p4 = scmp.ne.s32.totalorder %s788_s27, %s784_s26 }
   0xd   : > { %s1033_s12 = smov (%p31_p0, %s30_s12), 0  ;;  %s1035_s13 = smov (!%p31_p0, %s33_s13), %s808_s9 }
   0xe   : > { %p907_p3 = por %p205_p2, %p204_p1  ;;  %p35_p5 = scmp.ge.s32.totalorder %s1035_s13, 2 }
   0xf   : > { %p211_p6 = scmp.eq.s32.totalorder %s606_s11, 7  ;;  %p609_p7 = scmp.ge.s32.totalorder %s812_s10, 1 }
  0x10   : > { %p260_p8 = scmp.lt.s32.totalorder %s812_s10, 9  ;;  %s1037_s13 = smov (%p35_p5, %s1035_s13), 0 }
  0x11   : > { %p917_p9 = por %p211_p6, %p210_p4  ;;  %s191_s16 = ssub.s32 %s808_s9, %s1037_s13 }
  0x12   : > { %p261_p10 = pnand %p609_p7, %p260_p8  ;;  %s194_s17 = sadd.s32 1, %s792_s28 }
  0x13   : > { %p192_p11 = scmp.eq.s32.totalorder %s191_s16, 0  ;;  %s1023_s1 = sld [smem:[#allocation7_spill]] (!%p261_p10) }
  0x14   : > { %264 = sbr.rel (%p261_p10) target bundleno = 786 (0x312), region = 48  ;;  %s931_s21 = sshll.u32 (!%p261_p10), %s796_s29, 1 }
  0x15   : > { %s925_s18 = scalar_select %p192_p11, %s792_s28, %s194_s17  }
  0x16   : > { %p297_p12 = scmp.lt.s32.totalorder (!%p261_p10), %s800_s30, 1  ;;  %p299_p13 = scmp.lt.s32.totalorder (!%p261_p10), %s931_s21, 7 }
  0x17   : > { %s1024_s0 = sld [smem:[#allocation6_spill]] (!%p261_p10)  ;;  %p624_p0 = scmp.ne.s32.totalorder (!%p261_p10), %s796_s29, 3 }
  0x18   : > { %s453_s19 = sld [smem:[#allocation2]] (!%p261_p10) }
  0x19   : > { %v630_v0 = vld [vmem:[%s1023_s1 + $0x8] sm:$0xff]  ;;  %v629_v1 = vld [vmem:[%s1023_s1] sm:$0xff]  ;;  %s298_s24 = scalar_select %p297_p12, %s800_s30, 1  ;;  %vm342_vm4 = vcmask 261120   ;;  %v814_v36 = vmov 32.0   ;;  %vm464_vm12 = vcmask 1041409  }
  0x1a   : > { %352 = vmatpush.bf16.msra.mxu0 %v630_v0  ;;  %s300_s25 = scalar_select %p299_p13, %s931_s21, 7  ;;  %v704_v11 = vld [vmem:[%s1013_s2] ss:$0 sm:$0xff]  ;;  %vm468_vm13 = vcmask 58368  }
  0x1b   : > { %s612_s6 = sshll.u32 %s298_s24, 3 }
  0x1c   : > { %s302_s11 = sadd.s32 %s612_s6, %s300_s25 }
  0x1d   : > { %s613_s16 = sshll.u32 %s302_s11, 2 }
  0x1e   : > { %353 = vmatpush.bf16.msra.mxu0 %v629_v1  ;;  %s304_s20 = scalar_lea.vmem %s1024_s0, %s613_s16 }
  0x1f   : > { %v307_v2 = vld [vmem:[%s304_s20] sm:$0xf]  ;;  %v308_v3 = vld [vmem:[%s304_s20 + $0x4] sm:$0xf]  ;;  %s293_s20 = sand.u32 1, %s788_s27  }
  0x20   : > { %v309_v4 = vunpack.c.l.bf16 %v307_v2  ;;  %v310_v5 = vunpack.c.l.bf16 %v308_v3  ;;  %s610_s22 = sshll.u32 %s293_s20, 3 }
  0x21   : > { %s295_s23 = scalar_lea.vmem [#allocation3], %s610_s22 }
  0x22   : > { %vm311_vm0 = vcmp.eq.f32.partialorder %v309_v4, -inf  ;;  %vm312_vm1 = vcmp.eq.f32.partialorder %v310_v5, -inf  ;;  %s467_s24 = scalar_lea.vmem %s295_s23, %s931_s21 [#allocation3] }
  0x23   : > { %vm313_vm2 = vmpackc.low %vm311_vm0, %vm311_vm0 }
  0x24   : > { %vm314_vm3 = vmpackc.low %vm312_vm1, %vm312_vm1  ;;  %v315_v6 = vsel %vm313_vm2, 0, %v307_v2 }
  0x25   : > { %v316_v7 = vsel %vm314_vm3, 0, %v308_v3  ;;  %v327_v8 = vunpack.c.l.b16 %v315_v6  ;;  %v705_v3 = vld [vmem:[%s1014_s3] ss:$0 sm:$0xff] }
  0x26   : > { %v328_v9 = vunpack.c.l.b16 %v316_v7  ;;  %v706_v7 = vld [vmem:[%s1015_s4] ss:$0 sm:$0xff] }
  0x28   : > { %v329_v10 = vpack.c.b16 %v328_v9, %v327_v8 }
  0x2a   : > { %622 = vmatmul.msk.bf16.vlgmr.msra.gmra.mxu0 %vm342_vm4, %v329_v10  ;;  %v707_v10 = vld [vmem:[%s1016_s5] ss:$0 sm:$0xff] }
  0xa7   : > { %v355_v12 = vpop.f32.mrf.mxu0 }
  0xa8   : > { %v356_v13 = vadd.f32 %v704_v11, %v355_v12 }
  0xaa   : > { %v360_v14 = vmul.f32 %v356_v13, %v356_v13 }
  0xac   : > { %v362_v15 = vmul.f32 %v360_v14, %v356_v13 }
  0xae   : > { %v364_v16 = vmul.f32 0.044715, %v362_v15 }
  0xaf   : > { %v357_v17 = vpop.f32.mrf.mxu0 }
  0xb0   : > { %v358_v18 = vadd.f32 %v704_v11, %v357_v17  ;;  %v366_v19 = vadd.f32 %v364_v16, %v356_v13 }
  0xb2   : > { %v361_v20 = vmul.f32 %v358_v18, %v358_v18  ;;  %v368_v21 = vmul.f32 0.7978846, %v366_v19 }
  0xb4   : > { %v363_v22 = vmul.f32 %v361_v20, %v358_v18  ;;  %708 = vtanh.f32 %v368_v21 }
  0xb6   : > { %v365_v23 = vmul.f32 0.044715, %v363_v22 }
  0xb8   : > { %v367_v24 = vadd.f32 %v365_v23, %v358_v18  ;;  %v460_v23 = vlaneseq }
  0xba   : > { %v709_v25 = vpop.eup %708  ;;  %v369_v26 = vmul.f32 0.7978846, %v367_v24  ;;  %v454_v24 = vstv %s453_s19 }
  0xbb   : > { %v372_v27 = vadd.f32 1.0, %v709_v25  ;;  %v461_v25 = vand.u32 127, %v460_v23 }
  0xbc   : > { %710 = vtanh.f32 %v369_v26 }
  0xbd   : > { %v374_v28 = vmul.f32 0.5, %v372_v27  ;;  %712 = vrcp.f32 %v814_v36 }
  0xbf   : > { %v376_v29 = vmul.f32 %v374_v28, %v356_v13 }
  0xc1   : > { %v378_v30 = vsel %vm342_vm4, %v376_v29, 0.0 }
  0xc2   : > { %v711_v31 = vpop.eup %710  ;;  %379 = vadd.xlane.f32.xlu0 %v378_v30 }
  0xc3   : > { %v373_v32 = vadd.f32 1.0, %v711_v31  ;;  %v713_v37 = vpop.eup %712 }
  0xc4   : > { %v385_v38 = vmul.f32 32.0, %v713_v37  ;;  %vm389_vm5 = vweird.f32 %v713_v37 }
  0xc5   : > { %v375_v33 = vmul.f32 0.5, %v373_v32 }
  0xc6   : > { %v386_v39 = vsub.f32 1.0, %v385_v38 }
  0xc7   : > { %v377_v34 = vmul.f32 %v375_v33, %v358_v18 }
  0xc8   : > { %v387_v40 = vmul.f32 %v713_v37, %v386_v39 }
  0xc9   : > { %v381_v35 = vsel %vm342_vm4, %v377_v34, 0.0 }
  0xca   : > { %382 = vadd.xlane.f32.xlu0 %v381_v35  ;;  %v388_v41 = vadd.f32 %v713_v37, %v387_v40 }
  0xcc   : > { %v390_v42 = vsel %vm389_vm5, %v713_v37, %v388_v41 }
 0x135   : > { %v380_v43 = vpop.xlane.xlu0 %379 }
 0x136   : > { %v391_v44 = vmul.f32 %v390_v42, %v380_v43 }
 0x138   : > { %v393_v45 = vsub.f32 %v376_v29, %v391_v44 }
 0x13a   : > { %v395_v46 = vmul.f32 %v393_v45, %v393_v45 }
 0x13c   : > { %v397_v47 = vsel %vm342_vm4, %v395_v46, 0.0 }
 0x13d   : > { %398 = vadd.xlane.f32.xlu1 %v397_v47  ;;  %v383_v48 = vpop.xlane.xlu0 %382 }
 0x13e   : > { %v392_v49 = vmul.f32 %v390_v42, %v383_v48 }
 0x140   : > { %v394_v50 = vsub.f32 %v377_v34, %v392_v49 }
 0x142   : > { %v396_v51 = vmul.f32 %v394_v50, %v394_v50 }
 0x144   : > { %v400_v52 = vsel %vm342_vm4, %v396_v51, 0.0 }
 0x145   : > { %401 = vadd.xlane.f32.xlu1 %v400_v52 }
 0x1b0   : > { %v399_v53 = vpop.xlane.xlu1 %398 }
 0x1b1   : > { %v403_v54 = vmul.f32 %v399_v53, %v390_v42 }
 0x1b3   : > { %v405_v55 = vadd.f32 1e-05, %v403_v54 }
 0x1b5   : > { %714 = vrsqrt.f32 %v405_v55  ;;  %vm413_vm7 = vweird.f32 %v405_v55 }
 0x1b8   : > { %v402_v56 = vpop.xlane.xlu1 %401 }
 0x1b9   : > { %v404_v57 = vmul.f32 %v402_v56, %v390_v42 }
 0x1bb   : > { %v715_v58 = vpop.eup %714  ;;  %v406_v59 = vadd.f32 1e-05, %v404_v57 }
 0x1bc   : > { %v408_v60 = vmul.f32 %v715_v58, %v405_v55  ;;  %vm414_vm6 = vweird.f32 %v715_v58 }
 0x1bd   : > { %716 = vrsqrt.f32 %v406_v59  ;;  %vm415_vm8 = vmor %vm413_vm7, %vm414_vm6  ;;  %vm423_vm10 = vweird.f32 %v406_v59 }
 0x1be   : > { %v409_v61 = vmul.f32 %v715_v58, %v408_v60 }
 0x1c0   : > { %v410_v62 = vmul.f32 0.5, %v409_v61 }
 0x1c2   : > { %v411_v63 = vsub.f32 1.5, %v410_v62 }
 0x1c3   : > { %v717_v0 = vpop.eup %716 }
 0x1c4   : > { %v412_v1 = vmul.f32 %v715_v58, %v411_v63  ;;  %v418_v2 = vmul.f32 %v717_v0, %v406_v59  ;;  %vm424_vm9 = vweird.f32 %v717_v0 }
 0x1c5   : > { %vm425_vm11 = vmor %vm423_vm10, %vm424_vm9 }
 0x1c6   : > { %v419_v4 = vmul.f32 %v717_v0, %v418_v2  ;;  %v416_v5 = vsel %vm415_vm8, %v715_v58, %v412_v1 }
 0x1c7   : > { %v427_v6 = vmul.f32 %v416_v5, %v393_v45 }
 0x1c8   : > { %v420_v8 = vmul.f32 0.5, %v419_v4 }
 0x1c9   : > { %v433_v9 = vmul.f32 %v705_v3, %v427_v6 }
 0x1ca   : > { %v421_v11 = vsub.f32 1.5, %v420_v8 }
 0x1cb   : > { %v439_v12 = vadd.f32 %v706_v7, %v433_v9 }
 0x1cc   : > { %v422_v13 = vmul.f32 %v717_v0, %v421_v11 }
 0x1cd   : > { %v445_v14 = vmul.f32 %v707_v10, %v439_v12 }
 0x1ce   : > { %v426_v15 = vsel %vm425_vm11, %v717_v0, %v422_v13 }
 0x1cf   : > { %v447_v16 = vsel %vm342_vm4, %v445_v14, 0.0  ;;  %v428_v17 = vmul.f32 %v426_v15, %v394_v50 }
 0x1d0   : > { %448 = vadd.xlane.f32.xlu2 %v447_v16 }
 0x1d1   : > { %v434_v18 = vmul.f32 %v705_v3, %v428_v17 }
 0x1d3   : > { %v440_v19 = vadd.f32 %v706_v7, %v434_v18 }
 0x1d5   : > { %v446_v20 = vmul.f32 %v707_v10, %v440_v19 }
 0x1d7   : > { %v450_v21 = vsel %vm342_vm4, %v446_v20, 0.0 }
 0x1d8   : > { %451 = vadd.xlane.f32.xlu2 %v450_v21 }
 0x243   : > { %v449_v22 = vpop.xlane.xlu2 %448 }
 0x244   : > { %v455_v26 = vadd.f32 %v454_v24, %v449_v22 }
 0x246   : > { %v462_v29 = vperm.slane %v455_v26, %v461_v25 }
 0x24b   : > { %v452_v27 = vpop.xlane.xlu2 %451 }
 0x24c   : > { %v456_v28 = vadd.f32 %v454_v24, %v452_v27 }
 0x24d   : > { %473 = sbr.rel (%p624_p0) target bundleno = 771 (0x303), region = 52 }
 0x24e   : > { %v463_v30 = vperm.slane %v456_v28, %v461_v25 }
 0x250   : > { %v465_v31 = vsel %vm464_vm12, %v463_v30, %v462_v29 }
 0x251   : > { %469 = vst.msk [vmem:[%s467_s24] sm:$0x3] %vm468_vm13, %v465_v31 }
 0x252   : > { %vm509_vm14 = vcmask 64512  }
 0x258   : > { %v474_v32 = vld [vmem:[%s295_s23] sm:$0xff] }
 0x259   : > { %475 = vxpose.xlu0.b32.start.end [1/1] (short) (narrow) %v474_v32, 8 }
 0x2fd   : > { %v491_v33 = vpop.trf.xlu0 }
 0x2fe   : > { %v507_v34 = vadd.f32 %v491_v33, %v474_v32 }
 0x300   : > { %v508_v35 = vmul.f32 0.5, %v507_v34 }
 0x302   : > { %510 = vst.msk [vmem:[%s295_s23] sm:$0xff] %vm509_vm14, %v508_v35 }
 0x303 PF: > { %s626_s25 = sshll.u32 %s800_s30, 3  ;;  %s524_s16 = sshll.u32 %s295_s23, 4  ;;  %s525_s16 = int_to_ptr.vmem [resolvable:$true] %s524_s16 }
 0x304   : > { %s522_s21 = scalar_lea.hbm %s1018_s7, %s626_s25  ;;  %s512_s17 = scalar_lea.sflag [#allocation4], %s293_s20 }
 0x305   : > { %s526_s29 = sshll.u32 %s522_s21, 4  ;;  %s738_s30 = scalar_lea.hbm %s1018_s7, 16  ;;  %s527_s29 = int_to_ptr.hbm [resolvable:$true] %s526_s29 }
 0x306   : > { %s732_s19 = sshra.s32 %s527_s29, 4  ;;  %s733_s19 = int_to_ptr.hbm [resolvable:$true] %s732_s19 }
 0x307   : > { %s734_s22 = scalar_lea.hbm %s733_s19, 8  ;;  %p739_p5 = scmp.lt.s32.totalorder %s733_s19, %s1018_s7 }
 0x308   : > { %p735_p1 = scmp.ne.s32.totalorder %s733_s19, %s734_s22  ;;  %p740_p6 = scmp.lt.s32.totalorder %s738_s30, %s734_s22 }
 0x30a   : > { %p736_p2 = pnand %p735_p1, %p907_p3  ;;  %p741_p7 = por %p740_p6, %p739_p5 }
 0x30c   : > { %p737_p4 = pneg %p736_p2 }
 0x30e   : > { %p742_p8 = pnand %p741_p7, %p737_p4 }
 0x310   : > { %745 = shalt.err (!%p742_p8)
}
 0x311   : > { %631 = dma.vmem_to_hbm [thread:$0]  (%p907_p3), %s525_s16, 128, %s527_s29, %s512_s17  }
 0x312 PF: > { %p637_p10 = scmp.ge.s32.totalorder %s812_s10, 2  ;;  %s538_s20 = sand.u32 1, %s784_s26  }
 0x313   : > { %s539_s0 = scalar_lea.sflag [#allocation4], %s538_s20 }
 0x314   : > { %p634_p11 = pnand %p637_p10, %p917_p9 }
 0x316   : > { %p635_p12 = pneg %p634_p11 }
 0x318   : > { %779 = dma.done.wait (%p635_p12), %s539_s0, 128  }
 0x319   : > { %781 = vsyncadd (%p635_p12), %s539_s0, 4294967168  ;;  %s21_s10 = sadd.s32 1, %s812_s10   ;;  %s1025_s26 = smov %s788_s27 }
 0x31a   : > { %p18_p13 = scmp.ge.s32.totalorder %s21_s10, 10   ;;  %s1026_s27 = smov %s792_s28 }
 0x31b   : > { %s1027_s28 = smov %s925_s18  ;;  %s1028_s29 = smov %s804_s8 }
 0x31c   : > { %s1029_s30 = smov %s808_s9  ;;  %s1030_s8 = smov %s1033_s12 }
 0x31d   : > { %s1031_s9 = smov %s1037_s13  ;;  %20 = sbr.rel (!%p18_p13) target bundleno = 9 (0x9), region = 88 }
 0x322   :  { %545 = vsyncpa [#allocation4], 1 }
 0x323   :  { %547 = vsyncpa [#allocation4 + $0x1], 1 }

</bundles_post_ra>
